<compile_context>
chip_gen: v5e
topology: v5e:2x2
jax: 0.10.0
libtpu: 0.0.40
codegen_flags: <defaults>
</compile_context>

<pallas_src>
import math

import jax
import jax.numpy as jnp
from jax import lax
from jax.experimental import pallas as pl
from jax.experimental.pallas import tpu as pltpu

EPS = 1e-5


# ----------------------------- Pallas kernels ------------------------------ #

def _ln_normalize(x):
    """Per-row (lane-axis) mean/var in f32; rsqrt rides the EUP slot."""
    mean = jnp.mean(x, axis=-1, keepdims=True)          # XLU reduce
    xc = x - mean
    var = jnp.mean(xc * xc, axis=-1, keepdims=True)     # two-pass (robust)
    return xc * lax.rsqrt(var + EPS)                    # EUP rsqrt


def _layernorm_kernel_bias(x_ref, w_ref, b_ref, o_ref):
    x = x_ref[...].astype(jnp.float32)                  # [tm, D]
    y = _ln_normalize(x) * w_ref[...] + b_ref[...]      # w/b already f32
    o_ref[...] = y.astype(o_ref.dtype)


def _layernorm_kernel_nobias(x_ref, w_ref, o_ref):
    x = x_ref[...].astype(jnp.float32)                  # [tm, D]
    y = _ln_normalize(x) * w_ref[...]
    o_ref[...] = y.astype(o_ref.dtype)


# ------------------------------- tiling ------------------------------------ #

def _round_up(v, m):
    return ((v + m - 1) // m) * m


def _vmem_budget_and_cap():
    """(pipelined-footprint budget, physical VMEM cap) for this generation."""
    try:
        cap = int(pltpu.get_tpu_info().vmem_capacity_bytes)
    except Exception:
        cap = 64 * 1024 * 1024                 # conservative (v7x per-TC)
    budget = min(int(cap * 0.70), 96 * 1024 * 1024)
    return budget, cap


def _pick_row_tile(rows, feat, in_itemsize, out_itemsize, budget):
    """Row tile: multiple of 8, multi-MiB x blocks, footprint within budget."""
    # Per-row bytes of the pipelined footprint: x + out blocks double-buffered
    # plus ~3 block-sized f32 temporaries in the kernel body (upcast/xc/y).
    per_row = feat * (2 * in_itemsize + 2 * out_itemsize + 3 * 4)
    tm_cap = max(8, (budget // per_row) // 8 * 8)
    # Target ~8 MiB x blocks so the ~0.35us/step pipeline overhead amortizes.
    target_x_bytes = 8 * 1024 * 1024
    tm_target = max(8, (target_x_bytes // (feat * in_itemsize)) // 8 * 8)
    tm = min(tm_cap, tm_target, _round_up(max(rows, 1), 8))
    # Keep >= 2 grid steps so both v7x TensorCores get work (harmless elsewhere).
    while tm >= 16 and pl.cdiv(rows, tm) < 2:
        tm = max(8, (tm // 2) // 8 * 8)
    return tm


def _vmem_limit(tm, feat, in_itemsize, out_itemsize, cap):
    footprint = tm * feat * (2 * in_itemsize + 2 * out_itemsize + 3 * 4)
    footprint += 4 * feat * 4                       # resident weight + bias (f32)
    limit = int(footprint * 1.25) + (2 << 20)       # margin for compiler scratch
    return min(max(limit, 32 * 1024 * 1024), cap)


# ------------------------------- wrapper ------------------------------------ #

def layer_norm_forward(x, weight, bias=None):
    """F.layer_norm(x, (D,), weight, bias, eps=1e-5) — normalize over last dim."""
    orig_shape = x.shape
    D = orig_shape[-1]
    R = int(math.prod(orig_shape[:-1])) if len(orig_shape) > 1 else 1
    x2 = x.reshape(R, D)

    in_b = jnp.dtype(x.dtype).itemsize
    out_b = in_b
    budget, cap = _vmem_budget_and_cap()
    # TODO(synk): no D-chunked reduction fallback for D so large that a single
    # (8, D) f32 block plus temporaries exceeds VMEM.
    tm = _pick_row_tile(R, D, in_b, out_b, budget)
    grid = (pl.cdiv(R, tm),)
    vmem_bytes = _vmem_limit(tm, D, in_b, out_b, cap)

    w2 = weight.reshape(1, D).astype(jnp.float32)

    in_specs = [
        pl.BlockSpec((tm, D), lambda i: (i, 0)),     # activations (ragged last block OK)
        pl.BlockSpec((1, D), lambda i: (0, 0)),      # weight (resident)
    ]
    args = [x2, w2]
    if bias is not None:
        kernel = _layernorm_kernel_bias
        in_specs.append(pl.BlockSpec((1, D), lambda i: (0, 0)))   # bias (resident)
        args.append(bias.reshape(1, D).astype(jnp.float32))
    else:
        kernel = _layernorm_kernel_nobias

    out = pl.pallas_call(
        kernel,
        out_shape=jax.ShapeDtypeStruct((R, D), x.dtype),
        grid_spec=pltpu.PrefetchScalarGridSpec(
            num_scalar_prefetch=0,
            grid=grid,
            in_specs=in_specs,
            out_specs=pl.BlockSpec((tm, D), lambda i: (i, 0)),
        ),
        compiler_params=pltpu.CompilerParams(
            dimension_semantics=("parallel",),
            vmem_limit_bytes=vmem_bytes,
        ),
    )(*args)

    return out.reshape(orig_shape)


# ------------------------------ reference ----------------------------------- #

def reference_layer_norm(x, weight, bias=None, eps=EPS):
    xf = x.astype(jnp.float32)
    mean = jnp.mean(xf, axis=-1, keepdims=True)
    var = jnp.mean(jnp.square(xf - mean), axis=-1, keepdims=True)
    y = (xf - mean) / jnp.sqrt(var + eps)
    y = y * weight.astype(jnp.float32)
    if bias is not None:
        y = y + bias.astype(jnp.float32)
    return y.astype(x.dtype)


# --------------------------------- main -------------------------------------- #

if __name__ == "__main__":
    key = jax.random.PRNGKey(0)
    kx, kw, kb = jax.random.split(key, 3)

    # Small shapes consistent with the module: batch=2, channels=4, seq=16,
    # hidden (= ndim, the normalized dim) = 128 (lane-dense output).
    B, C, S, D = 2, 4, 16, 128
    x = jax.random.normal(kx, (B, C, S, D), jnp.float32)
    # Non-trivial params so the scale/shift path is actually exercised
    # (module init is ones/zeros, but trained params are arbitrary).
    weight = 1.0 + 0.1 * jax.random.normal(kw, (D,), jnp.float32)
    bias = 0.1 * jax.random.normal(kb, (D,), jnp.float32)

    # bias=True variant
    out = jax.block_until_ready(layer_norm_forward(x, weight, bias))
    ref = reference_layer_norm(x, weight, bias)
    assert out.shape == x.shape, out.shape
    max_err = float(jnp.max(jnp.abs(out - ref)))
    assert jnp.allclose(out, ref, rtol=1e-5, atol=1e-5), max_err

    # bias=False variant (nn.Parameter is None in the module)
    out_nb = jax.block_until_ready(layer_norm_forward(x, weight, None))
    ref_nb = reference_layer_norm(x, weight, None)
    max_err_nb = float(jnp.max(jnp.abs(out_nb - ref_nb)))
    assert jnp.allclose(out_nb, ref_nb, rtol=1e-5, atol=1e-5), max_err_nb

    print("KERNEL_OK")
</pallas_src>

<mosaic_0001>
module attributes {stable_mosaic.version = 11 : i64} {
  func.func @_layernorm_kernel_bias(%arg0: i32, %arg1: memref<64x128xf32, #tpu.memory_space<vmem>>, %arg2: memref<1x128xf32, #tpu.memory_space<vmem>>, %arg3: memref<1x128xf32, #tpu.memory_space<vmem>>, %arg4: memref<64x128xf32, #tpu.memory_space<vmem>>) attributes {dimension_semantics = [#tpu.dimension_semantics<parallel>], iteration_bounds = array<i64: 2>, scalar_prefetch = 0 : i64, scratch_operands = 0 : i64, tpu.core_type = #tpu.core_type<tc>, window_params = [{transform_indices = @transform_0, window_bounds = array<i64: 64, 128>}, {pipeline_mode = #tpu.pipeline_mode<synchronous>, transform_indices = @transform_1, window_bounds = array<i64: 1, 128>}, {pipeline_mode = #tpu.pipeline_mode<synchronous>, transform_indices = @transform_2, window_bounds = array<i64: 1, 128>}, {transform_indices = @transform_3, window_bounds = array<i64: 64, 128>}]} {
    %c0 = arith.constant 0 : index
    %c0_0 = arith.constant 0 : index
    %0 = vector.load %arg1[%c0, %c0_0] : memref<64x128xf32, #tpu.memory_space<vmem>>, vector<64x128xf32>
    %cst = arith.constant dense<0.000000e+00> : vector<64xf32>
    %1 = vector.multi_reduction <add>, %0, %cst [1] : vector<64x128xf32> to vector<64xf32>
    %2 = vector.shape_cast %1 : vector<64xf32> to vector<64x1xf32>
    %cst_1 = arith.constant 1.280000e+02 : f32
    %3 = vector.broadcast %cst_1 : f32 to vector<64x1xf32>
    %4 = arith.divf %2, %3 : vector<64x1xf32>
    %5 = vector.broadcast %4 : vector<64x1xf32> to vector<64x128xf32>
    %6 = arith.subf %0, %5 : vector<64x128xf32>
    %7 = arith.mulf %6, %6 : vector<64x128xf32>
    %cst_2 = arith.constant dense<0.000000e+00> : vector<64xf32>
    %8 = vector.multi_reduction <add>, %7, %cst_2 [1] : vector<64x128xf32> to vector<64xf32>
    %9 = vector.shape_cast %8 : vector<64xf32> to vector<64x1xf32>
    %cst_3 = arith.constant 1.280000e+02 : f32
    %10 = vector.broadcast %cst_3 : f32 to vector<64x1xf32>
    %11 = arith.divf %9, %10 : vector<64x1xf32>
    %cst_4 = arith.constant 9.99999974E-6 : f32
    %12 = vector.broadcast %cst_4 : f32 to vector<64x1xf32>
    %13 = arith.addf %11, %12 : vector<64x1xf32>
    %14 = math.rsqrt %13 : vector<64x1xf32>
    %15 = vector.broadcast %14 : vector<64x1xf32> to vector<64x128xf32>
    %16 = arith.mulf %6, %15 : vector<64x128xf32>
    %c0_5 = arith.constant 0 : index
    %c0_6 = arith.constant 0 : index
    %17 = vector.load %arg2[%c0_5, %c0_6] : memref<1x128xf32, #tpu.memory_space<vmem>>, vector<1x128xf32>
    %18 = vector.broadcast %17 : vector<1x128xf32> to vector<64x128xf32>
    %19 = arith.mulf %16, %18 : vector<64x128xf32>
    %c0_7 = arith.constant 0 : index
    %c0_8 = arith.constant 0 : index
    %20 = vector.load %arg3[%c0_7, %c0_8] : memref<1x128xf32, #tpu.memory_space<vmem>>, vector<1x128xf32>
    %21 = vector.broadcast %20 : vector<1x128xf32> to vector<64x128xf32>
    %22 = arith.addf %19, %21 : vector<64x128xf32>
    %c0_9 = arith.constant 0 : index
    %c0_10 = arith.constant 0 : index
    %23 = vector.load %arg4[%c0_9, %c0_10] : memref<64x128xf32, #tpu.memory_space<vmem>>, vector<64x128xf32>
    tpu.vector_store %arg4[%c0_9, %c0_10], %22 {strides = array<i32>} : memref<64x128xf32, #tpu.memory_space<vmem>>, vector<64x128xf32>,
    return
  }
  func.func @transform_0(%arg0: i32) -> (i32, i32) {
    %c0_i32 = arith.constant 0 : i32
    %c0_i32_0 = arith.constant 0 : i32
    return %arg0, %c0_i32 : i32, i32
  }
  func.func @transform_1(%arg0: i32) -> (i32, i32) {
    %c0_i32 = arith.constant 0 : i32
    %c0_i32_0 = arith.constant 0 : i32
    %c0_i32_1 = arith.constant 0 : i32
    return %c0_i32, %c0_i32_0 : i32, i32
  }
  func.func @transform_2(%arg0: i32) -> (i32, i32) {
    %c0_i32 = arith.constant 0 : i32
    %c0_i32_0 = arith.constant 0 : i32
    %c0_i32_1 = arith.constant 0 : i32
    return %c0_i32, %c0_i32_0 : i32, i32
  }
  func.func @transform_3(%arg0: i32) -> (i32, i32) {
    %c0_i32 = arith.constant 0 : i32
    %c0_i32_0 = arith.constant 0 : i32
    return %arg0, %c0_i32 : i32, i32
  }
}

</mosaic_0001>

<bundles_post_ra>
// kernel: tpu_custom_call.1
= control target key start
LH: loop header
LB: loop body
LE: loop exit
PB: predicated region body
PF: predicated region fallthrough
CT: control target
= control target key end

     0   :  { %8 = vsyncpa [#allocation3], 0  ;;  %s1041_s0 = inlined_call_operand.hbm [shape: f32[128,128], index: 0, kind: input, shape index: {}]   ;;  %s1042_s1 = inlined_call_operand.hbm [shape: f32[1,128], index: 1, kind: input, shape index: {}]   ;;  %s1043_s2 = inlined_call_operand.vmem [shape: f32[1,128], index: 2, kind: input, shape index: {}]   ;;  %s1044_s3 = inlined_call_operand.hbm [shape: f32[128,128], index: 3, kind: output, shape index: {}]  }
   0x1   :  { %10 = vsyncpa [#allocation3 + $0x1], 0 }
   0x2   :  { %11 = vsyncpa [#allocation6], 0 }
   0x3   :  { %12 = vsyncpa [#allocation4], 0 }
   0x4   :  { %14 = vsyncpa [#allocation4 + $0x1], 0  ;;  %s772_s12 = smov 0   ;;  %s774_s13 = smov 0  }
   0x5   :  { %s776_s14 = smov 0   ;;  %s778_s15 = smov 0  }
   0x6 LB: > { %s793_s16 = sadd.s32 4294967295, %s744_s15   ;;  %s514_s17 = sadd.s32 4294967294, %s744_s15   ;;  %s744_s15 = sphi %s778_s15, %s1057_s15   ;;  %s740_s14 = sphi %s776_s14, %s1056_s14   ;;  %s736_s13 = sphi %s774_s13, %s1055_s13   ;;  %s732_s12 = sphi %s772_s12, %s1054_s12  }
   0x7   : > { %s797_s18 = sadd.s32 1, %s744_s15   ;;  %s27_s19 = sadd.s32 1, %s740_s14 }
   0x8   : > { %s24_s20 = ssub.s32 %s744_s15, %s797_s18  ;;  %p34_p0 = scmp.ne.s32.totalorder %s740_s14, %s736_s13 }
   0x9   : > { %p25_p1 = scmp.eq.s32.totalorder %s24_s20, 0  ;;  %p35_p2 = scmp.eq.s32.totalorder %s744_s15, 0 }
   0xa   : > { %p40_p3 = scmp.ne.s32.totalorder %s736_s13, %s732_s12  ;;  %p41_p4 = scmp.eq.s32.totalorder %s793_s16, 0 }
   0xb   : > { %s809_s21 = scalar_select %p25_p1, %s740_s14, %s27_s19  }
   0xc   : > { %p811_p5 = por %p35_p2, %p34_p0  ;;  %p817_p6 = por %p41_p4, %p40_p3 }
   0xd   : > { %p106_p7 = scmp.eq.s32.totalorder %s793_s16, 1  ;;  %p112_p8 = scmp.eq.s32.totalorder %s514_s17, 1 }
   0xe   : > { %p515_p9 = scmp.ge.s32.totalorder %s744_s15, 1  ;;  %p119_p10 = scmp.lt.s32.totalorder %s744_s15, 3 }
   0xf   : > { %p824_p11 = por %p106_p7, %p34_p0  ;;  %p828_p12 = por %p112_p8, %p40_p3 }
  0x10   : > { %p832_p13 = pnand %p515_p9, %p119_p10  ;;  %s131_s29 = sshll.u32 %s1042_s1, 4  ;;  %s132_s29 = int_to_ptr.hbm [resolvable:$true] %s131_s29 }
  0x11   : > { %s746_s30 = smov [#allocation5]   ;;  %p553_p3 = scmp.lt.s32.totalorder %s744_s15, 2 }
  0x12   : > { %p540_p1 = pneg %p832_p13  ;;  %s133_s4 = sshll.u32 %s746_s30, 4  ;;  %s134_s4 = int_to_ptr.vmem [resolvable:$true] %s133_s4 }
  0x13   : > { %s147_s5 = sand.u32 1, %s740_s14   ;;  %p848_p7 = pnand %p553_p3, %p811_p5 }
  0x14   : > { %p541_p2 = pnand %p540_p1, %p41_p4  ;;  %s518_s7 = sshll.u32 %s147_s5, 6 }
  0x15   : > { %s530_s8 = sshll.u32 %s744_s15, 6  ;;  %s151_s19 = scalar_lea.vmem [#allocation2], %s518_s7 }
  0x16   : > { %543 = dma.hbm_to_vmem [thread:$0]  (!%p541_p2), %s132_s29, 16, %s134_s4, [#allocation6]  }
  0x17   : > { %s156_s11 = scalar_lea.hbm %s1041_s0, %s530_s8  ;;  %s159_s20 = sshll.u32 %s151_s19, 4  ;;  %s160_s20 = int_to_ptr.vmem [resolvable:$true] %s159_s20 }
  0x18   : > { %s157_s17 = sshll.u32 %s156_s11, 4  ;;  %s148_s27 = scalar_lea.sflag [#allocation3], %s147_s5  ;;  %s158_s17 = int_to_ptr.hbm [resolvable:$true] %s157_s17 }
  0x19   : > { %s644_s28 = sshra.s32 %s158_s17, 4  ;;  %p648_p8 = pneg %p848_p7  ;;  %s645_s28 = int_to_ptr.hbm [resolvable:$true] %s644_s28 }
  0x1a   : > { %s646_s22 = scalar_lea.hbm %s645_s28, 64  ;;  %s651_s4 = scalar_lea.hbm %s1041_s0, 128 }
  0x1b   : > { %p647_p5 = scmp.ne.s32.totalorder %s645_s28, %s646_s22  ;;  %p652_p1 = scmp.lt.s32.totalorder %s645_s28, %s1041_s0 }
  0x1c   : > { %p653_p2 = scmp.lt.s32.totalorder %s651_s4, %s646_s22 }
  0x1d   : > { %p649_p9 = pnand %p648_p8, %p647_p5 }
  0x1e   : > { %p654_p3 = por %p653_p2, %p652_p1 }
  0x1f   : > { %p650_p10 = pneg %p649_p9 }
  0x21   : > { %p655_p0 = pnand %p654_p3, %p650_p10 }
  0x23   : > { %658 = shalt.err (!%p655_p0)
}
  0x24   : > { %s747_s5 = smov 128   ;;  %s748_s7 = smov 8  }
  0x25   : > { %547 = dma.hbm_to_vmem [thread:$0]  (!%p848_p7), %s158_s17, 1024, %s160_s20, %s148_s27, %s747_s5, %s747_s5, %s748_s7  }
  0x26   : > { %171 = sbr.rel (%p832_p13) target bundleno = 342 (0x156), region = 32  ;;  %s869_s10 = sand.u32 (!%p832_p13), 1, %s736_s13  }
  0x27   : > { %s522_s11 = sshll.u32 (!%p832_p13), %s869_s10, 6  ;;  %s174_s19 = scalar_lea.sflag (!%p832_p13), [#allocation3], %s869_s10 }
  0x28   : > { %s177_s28 = scalar_lea.vmem (!%p832_p13), [#allocation2], %s522_s11 }
  0x2b   : > { %719 = dma.done.wait (%p817_p6), %s174_s19, 1024  }
  0x2c   : > { %721 = vsyncadd (%p817_p6), %s174_s19, 4294966272 }
  0x2d   : > { %723 = dma.done.wait (%p41_p4), [#allocation6], 16  }
  0x2e   : > { %725 = vsyncadd (%p41_p4), [#allocation6], 4294967280  ;;  %v212_v0 = vld [vmem:[%s177_s28 + $0x20] sm:$0xff]  ;;  %v210_v1 = vld [vmem:[%s177_s28 + $0x10] sm:$0xff]  ;;  %v749_v8 = vmov 128.0   ;;  %s969_s6 = scalar_lea.vmem [#allocation7], %s522_s11 }
  0x2f   : > { %v208_v2 = vld [vmem:[%s177_s28] sm:$0xff]  ;;  %224 = vadd.xlane.f32.xlu2 %v212_v0  ;;  %220 = vadd.xlane.f32.xlu1 %v210_v1  ;;  %v213_v3 = vld [vmem:[%s177_s28 + $0x28] sm:$0xff]  ;;  %v211_v4 = vld [vmem:[%s177_s28 + $0x18] sm:$0xff]  ;;  %596 = vrcp.f32 %v749_v8  ;;  %s531_s17 = sshll.u32 %s793_s16, 6  ;;  %s428_s16 = sshll.u32 %s969_s6, 4  ;;  %s429_s16 = int_to_ptr.vmem [resolvable:$true] %s428_s16 }
  0x30   : > { %216 = vadd.xlane.f32.xlu0 %v208_v2  ;;  %v209_v5 = vld [vmem:[%s177_s28 + $0x8] sm:$0xff]  ;;  %v215_v6 = vld [vmem:[%s177_s28 + $0x38] sm:$0xff]  ;;  %v214_v7 = vld [vmem:[%s177_s28 + $0x30] sm:$0xff]  ;;  %s427_s22 = scalar_lea.hbm %s1044_s3, %s531_s17  ;;  %s416_s30 = scalar_lea.sflag [#allocation4], %s869_s10 }
  0x31   : > { %s430_s29 = sshll.u32 %s427_s22, 4  ;;  %s694_s7 = scalar_lea.hbm %s1044_s3, 128  ;;  %s431_s29 = int_to_ptr.hbm [resolvable:$true] %s430_s29 }
  0x32   : > { %s688_s4 = sshra.s32 %s431_s29, 4  ;;  %s689_s4 = int_to_ptr.hbm [resolvable:$true] %s688_s4 }
  0x33   : > { %s690_s9 = scalar_lea.hbm %s689_s4, 64  ;;  %p695_p0 = scmp.lt.s32.totalorder %s689_s4, %s1044_s3 }
  0x34   : > { %p691_p4 = scmp.ne.s32.totalorder %s689_s4, %s690_s9  ;;  %p696_p7 = scmp.lt.s32.totalorder %s694_s7, %s690_s9 }
  0x35   : > { %v597_v9 = vpop.eup %596 }
  0x36   : > { %v233_v10 = vmul.f32 128.0, %v597_v9  ;;  %vm237_vm0 = vweird.f32 %v597_v9  ;;  %p692_p6 = pnand %p691_p4, %p824_p11  ;;  %p697_p5 = por %p696_p7, %p695_p0 }
  0x37   : > { %226 = vadd.xlane.f32.xlu2 %v213_v3  ;;  %222 = vadd.xlane.f32.xlu1 %v211_v4 }
  0x38   : > { %218 = vadd.xlane.f32.xlu0 %v209_v5  ;;  %v234_v11 = vsub.f32 1.0, %v233_v10  ;;  %p693_p13 = pneg %p692_p6 }
  0x3a   : > { %v235_v12 = vmul.f32 %v597_v9, %v234_v11  ;;  %p698_p8 = pnand %p697_p5, %p693_p13 }
  0x3c   : > { %v236_v13 = vadd.f32 %v597_v9, %v235_v12 }
  0x3e   : > { %v883_v14 = vsel %vm237_vm0, %v597_v9, %v236_v13 }
  0x3f   : > { %230 = vadd.xlane.f32.xlu1 %v215_v6 }
  0x40   : > { %228 = vadd.xlane.f32.xlu0 %v214_v7 }
  0xa2   : > { %v225_v15 = vpop.xlane.xlu2 %224  ;;  %v221_v16 = vpop.xlane.xlu1 %220 }
  0xa3   : > { %v241_v17 = vmul.f32 %v883_v14, %v221_v16  ;;  %v217_v18 = vpop.xlane.xlu0 %216  ;;  %v243_v32 = vmul.f32 %v883_v14, %v225_v15 }
  0xa4   : > { %v239_v19 = vmul.f32 %v883_v14, %v217_v18 }
  0xa5   : > { %v887_v20 = vsub.f32 %v210_v1, %v241_v17  ;;  %v911_v37 = vsub.f32 %v212_v0, %v243_v32 }
  0xa6   : > { %v889_v21 = vsub.f32 %v208_v2, %v239_v19  ;;  %v940_v19 = vld [vmem:[#allocation5] ss:$0 sm:$0xff] }
  0xa7   : > { %v257_v22 = vmul.f32 %v887_v20, %v887_v20  ;;  %v259_v42 = vmul.f32 %v911_v37, %v911_v37 }
  0xa8   : > { %v255_v23 = vmul.f32 %v889_v21, %v889_v21 }
  0xa9   : > { %267 = vadd.xlane.f32.xlu1 %v257_v22 }
  0xaa   : > { %263 = vadd.xlane.f32.xlu2 %v255_v23  ;;  %v227_v24 = vpop.xlane.xlu2 %226  ;;  %v223_v25 = vpop.xlane.xlu1 %222 }
  0xab   : > { %v244_v26 = vmul.f32 %v883_v14, %v227_v24  ;;  %v242_v27 = vmul.f32 %v883_v14, %v223_v25  ;;  %v219_v28 = vpop.xlane.xlu0 %218 }
  0xac   : > { %v240_v29 = vmul.f32 %v883_v14, %v219_v28  ;;  %v950_v28 = vld [vmem:[%s1043_s2] ss:$0 sm:$0xff] }
  0xad   : > { %v898_v30 = vsub.f32 %v213_v3, %v244_v26  ;;  %v900_v31 = vsub.f32 %v211_v4, %v242_v27 }
  0xae   : > { %v903_v33 = vsub.f32 %v209_v5, %v240_v29 }
  0xaf   : > { %v260_v34 = vmul.f32 %v898_v30, %v898_v30  ;;  %v258_v35 = vmul.f32 %v900_v31, %v900_v31 }
  0xb0   : > { %v256_v36 = vmul.f32 %v903_v33, %v903_v33 }
  0xb1   : > { %273 = vadd.xlane.f32.xlu1 %v260_v34 }
  0xb2   : > { %269 = vadd.xlane.f32.xlu2 %v258_v35  ;;  %265 = vadd.xlane.f32.xlu0 %v256_v36  ;;  %v231_v39 = vpop.xlane.xlu1 %230 }
  0xb3   : > { %v229_v38 = vpop.xlane.xlu0 %228  ;;  %v246_v43 = vmul.f32 %v883_v14, %v231_v39 }
  0xb4   : > { %v245_v40 = vmul.f32 %v883_v14, %v229_v38 }
  0xb5   : > { %v921_v45 = vsub.f32 %v215_v6, %v246_v43 }
  0xb6   : > { %v914_v41 = vsub.f32 %v214_v7, %v245_v40 }
  0xb7   : > { %v262_v46 = vmul.f32 %v921_v45, %v921_v45 }
  0xb8   : > { %v261_v44 = vmul.f32 %v914_v41, %v914_v41 }
  0xba   : > { %271 = vadd.xlane.f32.xlu0 %v259_v42  ;;  %275 = vadd.xlane.f32.xlu2 %v261_v44 }
  0xc2   : > { %277 = vadd.xlane.f32.xlu0 %v262_v46 }
 0x11c   : > { %v268_v47 = vpop.xlane.xlu1 %267 }
 0x11d   : > { %v281_v48 = vmul.f32 %v268_v47, %v883_v14  ;;  %v264_v49 = vpop.xlane.xlu2 %263 }
 0x11e   : > { %v279_v50 = vmul.f32 %v264_v49, %v883_v14 }
 0x11f   : > { %v289_v51 = vadd.f32 1e-05, %v281_v48 }
 0x120   : > { %v287_v52 = vadd.f32 1e-05, %v279_v50 }
 0x121   : > { %598 = vrsqrt.f32 %v289_v51  ;;  %vm321_vm1 = vweird.f32 %v289_v51 }
 0x122   : > { %600 = vrsqrt.f32 %v287_v52  ;;  %vm301_vm5 = vweird.f32 %v287_v52 }
 0x124   : > { %v274_v53 = vpop.xlane.xlu1 %273 }
 0x125   : > { %v284_v54 = vmul.f32 %v274_v53, %v883_v14  ;;  %v270_v55 = vpop.xlane.xlu2 %269  ;;  %v266_v56 = vpop.xlane.xlu0 %265 }
 0x126   : > { %v282_v57 = vmul.f32 %v270_v55, %v883_v14  ;;  %v280_v58 = vmul.f32 %v266_v56, %v883_v14 }
 0x127   : > { %v599_v59 = vpop.eup %598  ;;  %v292_v60 = vadd.f32 1e-05, %v284_v54 }
 0x128   : > { %v601_v61 = vpop.eup %600  ;;  %v316_v62 = vmul.f32 %v599_v59, %v289_v51  ;;  %v930_v63 = vadd.f32 1e-05, %v282_v57  ;;  %v932_v0 = vadd.f32 1e-05, %v280_v58  ;;  %vm322_vm2 = vweird.f32 %v599_v59 }
 0x129   : > { %v296_v1 = vmul.f32 %v601_v61, %v287_v52  ;;  %602 = vrsqrt.f32 %v292_v60  ;;  %vm302_vm3 = vweird.f32 %v601_v61  ;;  %vm323_vm4 = vmor %vm321_vm1, %vm322_vm2  ;;  %vm351_vm7 = vweird.f32 %v292_v60 }
 0x12a   : > { %v317_v2 = vmul.f32 %v599_v59, %v316_v62  ;;  %604 = vrsqrt.f32 %v930_v63  ;;  %vm303_vm6 = vmor %vm301_vm5, %vm302_vm3  ;;  %vm331_vm9 = vweird.f32 %v930_v63  ;;  %vm311_vm14 = vweird.f32 %v932_v0 }
 0x12b   : > { %v297_v3 = vmul.f32 %v601_v61, %v296_v1  ;;  %606 = vrsqrt.f32 %v932_v0 }
 0x12c   : > { %v318_v4 = vmul.f32 0.5, %v317_v2 }
 0x12d   : > { %v298_v5 = vmul.f32 0.5, %v297_v3  ;;  %v276_v6 = vpop.xlane.xlu2 %275  ;;  %v272_v7 = vpop.xlane.xlu0 %271 }
 0x12e   : > { %v319_v8 = vsub.f32 1.5, %v318_v4  ;;  %v285_v9 = vmul.f32 %v276_v6, %v883_v14  ;;  %v283_v10 = vmul.f32 %v272_v7, %v883_v14 }
 0x12f   : > { %v603_v11 = vpop.eup %602  ;;  %v299_v12 = vsub.f32 1.5, %v298_v5 }
 0x130   : > { %v605_v13 = vpop.eup %604  ;;  %v320_v15 = vmul.f32 %v599_v59, %v319_v8  ;;  %v346_v16 = vmul.f32 %v603_v11, %v292_v60  ;;  %v938_v17 = vadd.f32 1e-05, %v285_v9  ;;  %v944_v24 = vadd.f32 1e-05, %v283_v10 }
 0x131   : > { %v607_v18 = vpop.eup %606  ;;  %v300_v22 = vmul.f32 %v601_v61, %v299_v12  ;;  %v326_v23 = vmul.f32 %v605_v13, %v930_v63  ;;  %vm352_vm8 = vweird.f32 %v603_v11  ;;  %vm332_vm11 = vweird.f32 %v605_v13 }
 0x132   : > { %v324_v25 = vsel %vm323_vm4, %v599_v59, %v320_v15  ;;  %v347_v26 = vmul.f32 %v603_v11, %v346_v16  ;;  %v306_v27 = vmul.f32 %v607_v18, %v932_v0  ;;  %608 = vrsqrt.f32 %v938_v17  ;;  %vm962_vm10 = vmor %vm351_vm7, %vm352_vm8 }
 0x133   : > { %v377_v29 = vmul.f32 %v324_v25, %v887_v20  ;;  %v304_v32 = vsel %vm303_vm6, %v601_v61, %v300_v22  ;;  %v327_v34 = vmul.f32 %v605_v13, %v326_v23  ;;  %610 = vrsqrt.f32 %v944_v24  ;;  %vm333_vm13 = vmor %vm331_vm9, %vm332_vm11 }
 0x134   : > { %v375_v35 = vmul.f32 %v304_v32, %v889_v21  ;;  %v348_v36 = vmul.f32 0.5, %v347_v26  ;;  %v307_v38 = vmul.f32 %v607_v18, %v306_v27  ;;  %vm312_vm12 = vweird.f32 %v607_v18 }
 0x135   : > { %v389_v39 = vmul.f32 %v940_v19, %v377_v29  ;;  %v328_v40 = vmul.f32 0.5, %v327_v34  ;;  %v278_v42 = vpop.xlane.xlu0 %277  ;;  %vm313_vm15 = vmor %vm311_vm14, %vm312_vm12  ;;  %vm361_vm0 = vweird.f32 %v938_v17  ;;  %vm341_vm4 = vweird.f32 %v944_v24 }
 0x136   : > { %v387_v20 = vmul.f32 %v940_v19, %v375_v35  ;;  %v349_v43 = vsub.f32 1.5, %v348_v36  ;;  %v308_v44 = vmul.f32 0.5, %v307_v38  ;;  %v286_v46 = vmul.f32 %v278_v42, %v883_v14 }
 0x137   : > { %v401_v21 = vadd.f32 %v950_v28, %v389_v39  ;;  %v329_v48 = vsub.f32 1.5, %v328_v40 }
 0x138   : > { %v399_v49 = vadd.f32 %v950_v28, %v387_v20  ;;  %v350_v50 = vmul.f32 %v603_v11, %v349_v43  ;;  %v309_v51 = vsub.f32 1.5, %v308_v44  ;;  %v294_v52 = vadd.f32 1e-05, %v286_v46  ;;  %v609_v53 = vpop.eup %608 }
 0x139   : > { %409 = vst [vmem:[%s969_s6 + $0x10] sm:$0xff] %v401_v21  ;;  %v330_v14 = vmul.f32 %v605_v13, %v329_v48  ;;  %v356_v56 = vmul.f32 %v609_v53, %v938_v17  ;;  %v611_v57 = vpop.eup %610  ;;  %vm362_vm1 = vweird.f32 %v609_v53 }
 0x13a   : > { %407 = vst [vmem:[%s969_s6] sm:$0xff] %v399_v49  ;;  %v354_v54 = vsel %vm962_vm10, %v603_v11, %v350_v50  ;;  %v310_v55 = vmul.f32 %v607_v18, %v309_v51  ;;  %612 = vrsqrt.f32 %v294_v52  ;;  %v336_v63 = vmul.f32 %v611_v57, %v944_v24  ;;  %vm363_vm3 = vmor %vm361_vm0, %vm362_vm1 }
 0x13b   : > { %v380_v58 = vmul.f32 %v354_v54, %v898_v30  ;;  %v334_v59 = vsel %vm333_vm13, %v605_v13, %v330_v14  ;;  %v357_v62 = vmul.f32 %v609_v53, %v356_v56  ;;  %vm342_vm2 = vweird.f32 %v611_v57 }
 0x13c   : > { %v378_v60 = vmul.f32 %v334_v59, %v900_v31  ;;  %v314_v61 = vsel %vm313_vm15, %v607_v18, %v310_v55  ;;  %v337_v30 = vmul.f32 %v611_v57, %v336_v63  ;;  %vm343_vm5 = vmor %vm341_vm4, %vm342_vm2  ;;  %vm371_vm7 = vweird.f32 %v294_v52 }
 0x13d   : > { %v392_v1 = vmul.f32 %v940_v19, %v380_v58  ;;  %v376_v0 = vmul.f32 %v314_v61, %v903_v33  ;;  %v358_v3 = vmul.f32 0.5, %v357_v62 }
 0x13e   : > { %v390_v2 = vmul.f32 %v940_v19, %v378_v60  ;;  %v338_v7 = vmul.f32 0.5, %v337_v30 }
 0x13f   : > { %v404_v4 = vadd.f32 %v950_v28, %v392_v1  ;;  %v388_v5 = vmul.f32 %v940_v19, %v376_v0  ;;  %v359_v6 = vsub.f32 1.5, %v358_v3 }
 0x140   : > { %v402_v31 = vadd.f32 %v950_v28, %v390_v2  ;;  %v613_v8 = vpop.eup %612  ;;  %v339_v10 = vsub.f32 1.5, %v338_v7 }
 0x141   : > { %412 = vst [vmem:[%s969_s6 + $0x28] sm:$0xff] %v404_v4  ;;  %v400_v33 = vadd.f32 %v950_v28, %v388_v5  ;;  %v360_v9 = vmul.f32 %v609_v53, %v359_v6  ;;  %v366_v11 = vmul.f32 %v613_v8, %v294_v52  ;;  %vm372_vm6 = vweird.f32 %v613_v8 }
 0x142   : > { %410 = vst [vmem:[%s969_s6 + $0x18] sm:$0xff] %v402_v31  ;;  %v340_v13 = vmul.f32 %v611_v57, %v339_v10  ;;  %vm373_vm8 = vmor %vm371_vm7, %vm372_vm6 }
 0x143   : > { %408 = vst [vmem:[%s969_s6 + $0x8] sm:$0xff] %v400_v33  ;;  %v364_v12 = vsel %vm363_vm3, %v609_v53, %v360_v9  ;;  %v367_v15 = vmul.f32 %v613_v8, %v366_v11 }
 0x144   : > { %v381_v16 = vmul.f32 %v364_v12, %v914_v41  ;;  %v344_v17 = vsel %vm343_vm5, %v611_v57, %v340_v13 }
 0x145   : > { %v368_v18 = vmul.f32 0.5, %v367_v15  ;;  %v379_v23 = vmul.f32 %v344_v17, %v911_v37 }
 0x146   : > { %v393_v22 = vmul.f32 %v940_v19, %v381_v16 }
 0x147   : > { %v369_v25 = vsub.f32 1.5, %v368_v18  ;;  %v391_v24 = vmul.f32 %v940_v19, %v379_v23 }
 0x148   : > { %v405_v26 = vadd.f32 %v950_v28, %v393_v22 }
 0x149   : > { %v370_v27 = vmul.f32 %v613_v8, %v369_v25  ;;  %v403_v41 = vadd.f32 %v950_v28, %v391_v24 }
 0x14a   : > { %413 = vst [vmem:[%s969_s6 + $0x30] sm:$0xff] %v405_v26 }
 0x14b   : > { %v374_v37 = vsel %vm373_vm8, %v613_v8, %v370_v27  ;;  %411 = vst [vmem:[%s969_s6 + $0x20] sm:$0xff] %v403_v41 }
 0x14c   : > { %v382_v29 = vmul.f32 %v374_v37, %v921_v45 }
 0x14e   : > { %v394_v32 = vmul.f32 %v940_v19, %v382_v29 }
 0x150   : > { %v406_v34 = vadd.f32 %v950_v28, %v394_v32 }
 0x152   : > { %414 = vst [vmem:[%s969_s6 + $0x38] sm:$0xff] %v406_v34 }
 0x153   : > { %701 = shalt.err (!%p698_p8)
}
 0x154   : > { %s750_s10 = smov 128   ;;  %s751_s28 = smov 8  }
 0x155   : > { %538 = dma.vmem_to_hbm [thread:$0]  (%p824_p11), %s429_s16, 1024, %s431_s29, %s416_s30, %s750_s10, %s750_s10, %s751_s28  }
 0x156 PF: > { %s445_s23 = sand.u32 1, %s732_s12   ;;  %p1053_p9 = scmp.ge.s32.totalorder %s744_s15, 2 }
 0x157   : > { %s446_s26 = scalar_lea.sflag [#allocation4], %s445_s23 }
 0x158   : > { %p549_p10 = pnand %p1053_p9, %p828_p12 }
 0x15a   : > { %p550_p1 = pneg %p549_p10 }
 0x15c   : > { %727 = dma.done.wait (%p550_p1), %s446_s26, 1024  }
 0x15d   : > { %729 = vsyncadd (%p550_p1), %s446_s26, 4294966272  ;;  %p17_p2 = scmp.ge.s32.totalorder %s797_s18, 4   ;;  %s1054_s12 = smov %s736_s13 }
 0x15e   : > { %s1055_s13 = smov %s740_s14  ;;  %s1056_s14 = smov %s809_s21 }
 0x15f   : > { %s1057_s15 = smov %s797_s18  ;;  %19 = sbr.rel (!%p17_p2) target bundleno = 6 (0x6), region = 81 }
 0x164   :  { %452 = vsyncpa [#allocation3], 1 }
 0x165   :  { %454 = vsyncpa [#allocation3 + $0x1], 1 }
 0x166   :  { %455 = vsyncpa [#allocation6], 1 }
 0x167   :  { %456 = vsyncpa [#allocation4], 1 }
 0x168   :  { %458 = vsyncpa [#allocation4 + $0x1], 1 }

</bundles_post_ra>
